<compile_context>
chip_gen: v6e
topology: v6e:2x2x1
jax: 0.10.0
libtpu: 0.0.40
codegen_flags: <defaults>
</compile_context>

<pallas_src>
import functools
import numpy as np
import jax
import jax.numpy as jnp
from jax.experimental import pallas as pl
from jax.experimental.pallas import tpu as pltpu


# ----------------------------------------------------------------------------
# Generation-aware sizing helpers
# ----------------------------------------------------------------------------
@functools.lru_cache(maxsize=None)
def _vmem_capacity_bytes():
    try:
        return int(pltpu.get_tpu_info().vmem_capacity_bytes)
    except Exception:
        return 64 * 1024 * 1024           # conservative fallback (v7x per-TC VMEM)


def _vmem_limit_bytes():
    cap = _vmem_capacity_bytes()
    # >= the 32 MiB default, <= capacity minus 16 MiB compiler headroom, <= 100 MiB.
    return max(32 * 1024 * 1024, min(cap - 16 * 1024 * 1024, 100 * 1024 * 1024))


def _compiler_params(sems):
    return pltpu.CompilerParams(dimension_semantics=sems,
                                vmem_limit_bytes=_vmem_limit_bytes())


def _row_tile(rows):
    # Multiple of 16 (bf16 sublane tile), capped at 512 rows, and split so the row
    # grid has >= 2 steps whenever possible (both v7x TensorCores get work).
    if rows <= 16:
        return rows
    tm = ((pl.cdiv(rows, 2) + 15) // 16) * 16
    return min(512, tm)


def _h_band(H, W, tc, budget_bytes):
    # Largest band height (divisor of H) whose conv working set -- double-buffered
    # bf16 xh/v/out bands + 2-row halos + f32 padded scratch -- stays well under the
    # scoped-VMEM budget.  Generation aware: budget shrinks on v7x (64 MiB physical).
    def conv_bytes(th):
        bands = 3 * 2 * th * W * tc * 2        # xh, v, out: double-buffered bf16
        halos = 2 * 2 * 2 * W * tc * 2         # prev/next 2-row halos, double-buffered
        scratch = (th + 4) * (W + 4) * tc * 4  # f32 padded band
        return bands + halos + scratch
    for th in (64, 32, 16, 8):
        if H % th == 0 and th < H and conv_bytes(th) <= budget_bytes // 2:
            return th
    return H


# ----------------------------------------------------------------------------
# In-kernel math helpers
# ----------------------------------------------------------------------------
_INV_SQRT2 = 0.7071067811865476


def _erf_f32(x):
    # float32-accurate erf (Abramowitz & Stegun 7.1.26, |err| < 1.5e-7); exp() runs
    # on the EUP.  Exact divide kept so GELU matches torch.nn.GELU() (erf, not tanh).
    p = 0.3275911
    a1, a2, a3, a4, a5 = 0.254829592, -0.284496736, 1.421413741, -1.453152027, 1.061405429
    ax = jnp.abs(x)
    t = 1.0 / (1.0 + p * ax)
    poly = ((((a5 * t + a4) * t + a3) * t + a2) * t + a1) * t
    y = 1.0 - poly * jnp.exp(-ax * ax)
    return jnp.where(x < 0, -y, y)


def _gelu_exact(x):
    return 0.5 * x * (1.0 + _erf_f32(x * _INV_SQRT2))


# ----------------------------------------------------------------------------
# Pallas kernels
# ----------------------------------------------------------------------------
def _ln_fc1_kernel(x_ref, g_ref, bln_ref, w1_ref, b1_ref, xn_ref, xh_ref, v_ref):
    # Fused LayerNorm + single (D, 2*hidden) fc1 matmul.  xn feeds the residual;
    # xh / v are the two lane-aligned halves of fc1 (== chunk(2, dim=-1)).
    Hd = xh_ref.shape[1]
    x = x_ref[...].astype(jnp.float32)
    mean = jnp.mean(x, axis=-1, keepdims=True)
    var = jnp.mean((x - mean) ** 2, axis=-1, keepdims=True)
    xn = (x - mean) * jax.lax.rsqrt(var + 1e-5) * g_ref[...] + bln_ref[...]
    xn_ref[...] = xn.astype(xn_ref.dtype)
    # bf16 MXU operands, f32 accumulation; bias added in f32.
    f = jnp.dot(xn.astype(jnp.bfloat16), w1_ref[...],
                preferred_element_type=jnp.float32) + b1_ref[...]
    xh_ref[...] = f[:, :Hd].astype(xh_ref.dtype)
    v_ref[...] = f[:, Hd:].astype(v_ref.dtype)


def _dwconv_gate_kernel(prev_ref, cur_ref, next_ref, v_ref, w_ref, b_ref,
                        o_ref, pad_ref):
    # prev/next: (1, 2, W, tc)  two-row halo blocks from the neighboring bands
    # cur, v:    (1, th, W, tc) NHWC bands (bf16)
    # w:         (5, 5, tc) folded multi-scale depthwise weights; b: (1, tc)
    # pad_ref:   VMEM scratch (th+4, W+4, tc) f32, zero-framed padded band.
    _, th, W, tc = o_ref.shape
    hb = pl.program_id(1)
    n_hb = pl.num_programs(1)

    # Zero only the halo frame: left/right column strips always (never overwritten);
    # top/bottom row strips only for edge bands (otherwise the halo overwrites them).
    side = jnp.zeros((th + 4, 2, tc), jnp.float32)
    pad_ref[:, 0:2, :] = side
    pad_ref[:, 2 + W:4 + W, :] = side

    @pl.when(hb == 0)
    def _():
        pad_ref[0:2, 2:2 + W, :] = jnp.zeros((2, W, tc), jnp.float32)

    @pl.when(hb > 0)
    def _():  # top halo: last 2 rows of the previous band
        pad_ref[0:2, 2:2 + W, :] = prev_ref[0].astype(jnp.float32)

    @pl.when(hb == n_hb - 1)
    def _():
        pad_ref[2 + th:4 + th, 2:2 + W, :] = jnp.zeros((2, W, tc), jnp.float32)

    @pl.when(hb < n_hb - 1)
    def _():  # bottom halo: first 2 rows of the next band
        pad_ref[2 + th:4 + th, 2:2 + W, :] = next_ref[0].astype(jnp.float32)

    pad_ref[2:2 + th, 2:2 + W, :] = cur_ref[0].astype(jnp.float32)

    w = w_ref[...].astype(jnp.float32)                   # (5, 5, tc)
    acc = jnp.zeros((th, W, tc), jnp.float32)
    for dx in range(5):
        # one sublane-misaligned column slab per dx (5 total, hoisted out of dy)
        col = pad_ref[:, dx:dx + W, :]                   # (th+4, W, tc)
        for dy in range(5):
            acc = acc + col[dy:dy + th] * w[dy, dx]      # leading-axis slice: cheap
    # fused epilogue: bias + exact GELU + elementwise gate with v (all f32)
    h = _gelu_exact(acc + b_ref[0])
    o_ref[0] = (h * v_ref[0].astype(jnp.float32)).astype(o_ref.dtype)


def _fc2_res_kernel(h_ref, w2_ref, b2_ref, res_ref, o_ref):
    # fused: h @ W2 (bf16 MXU, f32 acc) + b2 + residual (layernormed x)
    y = jnp.dot(h_ref[...], w2_ref[...], preferred_element_type=jnp.float32)
    o_ref[...] = (res_ref[...].astype(jnp.float32) + y + b2_ref[...]).astype(o_ref.dtype)


# ----------------------------------------------------------------------------
# pallas_call wrappers
# ----------------------------------------------------------------------------
def ln_fc1(x2d, gamma, beta, w1_bf16, b1):
    R, D = x2d.shape
    H2 = w1_bf16.shape[1]
    Hd = H2 // 2
    tm = _row_tile(R)
    row = lambda i: (i, 0)
    rep = lambda i: (0, 0)
    return pl.pallas_call(
        _ln_fc1_kernel,
        out_shape=(jax.ShapeDtypeStruct((R, D), x2d.dtype),
                   jax.ShapeDtypeStruct((R, Hd), jnp.bfloat16),
                   jax.ShapeDtypeStruct((R, Hd), jnp.bfloat16)),
        grid=(pl.cdiv(R, tm),),
        in_specs=[pl.BlockSpec((tm, D), row),
                  pl.BlockSpec((1, D), rep),
                  pl.BlockSpec((1, D), rep),
                  pl.BlockSpec((D, H2), rep),
                  pl.BlockSpec((1, H2), rep)],
        out_specs=(pl.BlockSpec((tm, D), row),
                   pl.BlockSpec((tm, Hd), row),
                   pl.BlockSpec((tm, Hd), row)),
        compiler_params=_compiler_params(("parallel",)),
    )(x2d, gamma.reshape(1, D), beta.reshape(1, D), w1_bf16, b1.reshape(1, H2))


def ms_dwconv_gate(img, v_img, w5, bconv):
    # img, v_img: (B, H, W, C) NHWC bf16.  Zero padding happens inside the kernel.
    B, H, W, C = img.shape
    tc = 128 if C % 128 == 0 else C
    th = _h_band(H, W, tc, _vmem_limit_bytes())
    assert H % th == 0 and C % tc == 0, (H, th, C, tc)
    n_hb, n_c = H // th, C // tc
    half = max(th // 2, 1)                 # prev/next specs use 2-row blocks along H
    h2m1 = max(H // 2 - 1, 0)

    cur_map = lambda b, h, c: (b, h, 0, c)
    prev_map = lambda b, h, c: (b, jnp.maximum(h * half - 1, 0), 0, c)
    next_map = lambda b, h, c: (b, jnp.minimum((h + 1) * half, h2m1), 0, c)

    return pl.pallas_call(
        _dwconv_gate_kernel,
        out_shape=jax.ShapeDtypeStruct((B, H, W, C), jnp.bfloat16),
        grid=(B, n_hb, n_c),
        in_specs=[pl.BlockSpec((1, 2, W, tc), prev_map),   # 2-row top-halo source
                  pl.BlockSpec((1, th, W, tc), cur_map),
                  pl.BlockSpec((1, 2, W, tc), next_map),   # 2-row bottom-halo source
                  pl.BlockSpec((1, th, W, tc), cur_map),   # gate input v
                  pl.BlockSpec((5, 5, tc), lambda b, h, c: (0, 0, c)),
                  pl.BlockSpec((1, tc), lambda b, h, c: (0, c))],
        out_specs=pl.BlockSpec((1, th, W, tc), cur_map),
        scratch_shapes=[pltpu.VMEM((th + 4, W + 4, tc), jnp.float32)],
        compiler_params=_compiler_params(("parallel", "parallel", "parallel")),
    )(img, img, img, v_img, w5, bconv.reshape(1, C))


def fc2_residual(h2d, w2_bf16, b2, res2d):
    R, Hd = h2d.shape
    D = w2_bf16.shape[1]
    tm = _row_tile(R)
    row = lambda i: (i, 0)
    rep = lambda i: (0, 0)
    return pl.pallas_call(
        _fc2_res_kernel,
        out_shape=jax.ShapeDtypeStruct((R, D), res2d.dtype),
        grid=(pl.cdiv(R, tm),),
        in_specs=[pl.BlockSpec((tm, Hd), row),
                  pl.BlockSpec((Hd, D), rep),
                  pl.BlockSpec((1, D), rep),
                  pl.BlockSpec((tm, D), row)],
        out_specs=pl.BlockSpec((tm, D), row),
        compiler_params=_compiler_params(("parallel",)),
    )(h2d, w2_bf16, b2.reshape(1, D), res2d)


# ----------------------------------------------------------------------------
# PPEG forward (glue in plain JAX; hot paths in Pallas).  Dropout p=0 -> identity.
# ----------------------------------------------------------------------------
def ppeg_forward(x, H, W, p):
    B, N, D = x.shape
    hidden = p["hidden"]
    xn, xh, v = ln_fc1(x.reshape(B * N, D), p["ln_g"], p["ln_b"],
                       p["w1_bf16"], p["b1"])
    # Token axis is (H*W, row-major) <-> PyTorch's transpose(1,2).view(B,C,H,W).
    h = ms_dwconv_gate(xh.reshape(B, H, W, hidden), v.reshape(B, H, W, hidden),
                       p["w5"], p["bconv"])
    out = fc2_residual(h.reshape(B * N, hidden), p["w2_bf16"], p["b2"], xn)
    return out.reshape(B, N, D)


# ----------------------------------------------------------------------------
# Deterministic parameter construction (shapes follow the PyTorch __init__)
# ----------------------------------------------------------------------------
def init_params(key, dim, scales=(1, 3, 5)):
    hidden = int(2 * dim / 3)
    n = len(scales)
    channels = [hidden - hidden // n * (n - 1)] + [hidden // n] * (n - 1)

    ks = jax.random.split(key, 12)
    p = {"hidden": hidden, "scales": scales, "channels": channels}
    p["ln_g"] = 1.0 + 0.1 * jax.random.normal(ks[0], (dim,), jnp.float32)
    p["ln_b"] = 0.1 * jax.random.normal(ks[1], (dim,), jnp.float32)
    p["w1"] = 0.2 * jax.random.normal(ks[2], (dim, 2 * hidden), jnp.float32)
    p["b1"] = 0.1 * jax.random.normal(ks[3], (2 * hidden,), jnp.float32)

    conv_ws, conv_bs = [], []
    for i, (k, ch) in enumerate(zip(scales, channels)):
        conv_ws.append(0.3 * jax.random.normal(ks[4 + 2 * i], (ch, 1, k, k), jnp.float32))
        conv_bs.append(0.1 * jax.random.normal(ks[5 + 2 * i], (ch,), jnp.float32))
    p["conv_ws"], p["conv_bs"] = conv_ws, conv_bs

    p["w2"] = 0.2 * jax.random.normal(ks[10], (hidden, dim), jnp.float32)
    p["b2"] = 0.1 * jax.random.normal(ks[11], (dim,), jnp.float32)

    # bf16 copies of the MXU weight operands (f32 masters kept for the references).
    p["w1_bf16"] = p["w1"].astype(jnp.bfloat16)
    p["w2_bf16"] = p["w2"].astype(jnp.bfloat16)

    # Fold the (1,3,5) depthwise kernels into one centered 5x5 per-channel weight.
    w5 = np.zeros((5, 5, hidden), np.float32)
    bconv = np.zeros((hidden,), np.float32)
    off = 0
    for wk, bk, k in zip(conv_ws, conv_bs, scales):
        ch = wk.shape[0]
        pad = (5 - k) // 2
        w5[pad:pad + k, pad:pad + k, off:off + ch] = np.transpose(np.asarray(wk)[:, 0], (1, 2, 0))
        bconv[off:off + ch] = np.asarray(bk)
        off += ch
    p["w5"] = jnp.asarray(w5)
    p["bconv"] = jnp.asarray(bconv)
    return p


# ----------------------------------------------------------------------------
# Pure-JAX references
# ----------------------------------------------------------------------------
def _reference_conv(img, p):
    P_HIGH = jax.lax.Precision.HIGHEST
    outs, off = [], 0
    for wk, bk, k in zip(p["conv_ws"], p["conv_bs"], p["scales"]):
        ch = wk.shape[0]
        seg = img[..., off:off + ch]
        kern = jnp.transpose(wk[:, 0], (1, 2, 0))[:, :, None, :]         # (k,k,1,ch) HWIO
        o = jax.lax.conv_general_dilated(
            seg, kern, window_strides=(1, 1), padding=[(k // 2, k // 2)] * 2,
            dimension_numbers=("NHWC", "HWIO", "NHWC"), feature_group_count=ch,
            precision=P_HIGH) + bk
        outs.append(o)
        off += ch
    return jnp.concatenate(outs, axis=-1)


def ppeg_reference(x, H, W, p, mixed):
    # mixed=False: exact fp32 mirror of the PyTorch forward.
    # mixed=True : mirrors the kernel's precision policy (bf16 MXU operands and bf16
    #              inter-kernel activations, f32 accumulation / LN / conv / GELU).
    P_HIGH = jax.lax.Precision.HIGHEST
    B, N, D = x.shape
    hidden = p["hidden"]
    mu = jnp.mean(x, -1, keepdims=True)
    var = jnp.mean((x - mu) ** 2, -1, keepdims=True)
    xn = (x - mu) * jax.lax.rsqrt(var + 1e-5) * p["ln_g"] + p["ln_b"]

    if mixed:
        f = jnp.dot(xn.astype(jnp.bfloat16), p["w1_bf16"],
                    preferred_element_type=jnp.float32) + p["b1"]
        xh = f[..., :hidden].astype(jnp.bfloat16).astype(jnp.float32)
        v = f[..., hidden:].astype(jnp.bfloat16).astype(jnp.float32)
    else:
        f = jnp.dot(xn, p["w1"], precision=P_HIGH) + p["b1"]
        xh, v = f[..., :hidden], f[..., hidden:]

    conv = _reference_conv(xh.reshape(B, H, W, hidden), p).reshape(B, N, hidden)
    act = jax.nn.gelu(conv, approximate=False) * v
    if mixed:
        out = jnp.dot(act.astype(jnp.bfloat16), p["w2_bf16"],
                      preferred_element_type=jnp.float32) + p["b2"]
    else:
        out = jnp.dot(act, p["w2"], precision=P_HIGH) + p["b2"]
    # drop = 0.0 -> dropout is identity
    return xn + out


# ----------------------------------------------------------------------------
if __name__ == "__main__":
    key = jax.random.PRNGKey(0)
    B, H, W = 2, 8, 8
    dim = 192                    # -> hidden = 128: lane-dense conv channels / MXU widths
    N = H * W

    params = init_params(key, dim)
    x = jax.random.normal(jax.random.fold_in(key, 999), (B, N, dim), jnp.float32)

    out = jax.block_until_ready(ppeg_forward(x, H, W, params))

    # Tight check against a reference that mirrors the kernel's mixed precision.
    ref_mixed = ppeg_reference(x, H, W, params, mixed=True)
    np.testing.assert_allclose(np.asarray(out), np.asarray(ref_mixed),
                               rtol=1e-2, atol=1e-2)

    # Sanity check against the exact fp32 PyTorch-equivalent forward; looser tolerance
    # covers the bf16 MXU-operand / bf16-activation quantization adopted from the review.
    ref_f32 = ppeg_reference(x, H, W, params, mixed=False)
    np.testing.assert_allclose(np.asarray(out), np.asarray(ref_f32),
                               rtol=6e-2, atol=5e-1)

    print("KERNEL_OK")
</pallas_src>

<mosaic_0001>
module attributes {stable_mosaic.version = 11 : i64} {
  func.func @_ln_fc1_kernel(%arg0: i32, %arg1: memref<64x192xf32, #tpu.memory_space<vmem>>, %arg2: memref<1x192xf32, #tpu.memory_space<vmem>>, %arg3: memref<1x192xf32, #tpu.memory_space<vmem>>, %arg4: memref<192x256xbf16, #tpu.memory_space<vmem>>, %arg5: memref<1x256xf32, #tpu.memory_space<vmem>>, %arg6: memref<64x192xf32, #tpu.memory_space<vmem>>, %arg7: memref<64x128xbf16, #tpu.memory_space<vmem>>, %arg8: memref<64x128xbf16, #tpu.memory_space<vmem>>) attributes {dimension_semantics = [#tpu.dimension_semantics<parallel>], iteration_bounds = array<i64: 2>, scalar_prefetch = 0 : i64, scratch_operands = 0 : i64, tpu.core_type = #tpu.core_type<tc>, window_params = [{transform_indices = @transform_0, window_bounds = array<i64: 64, 192>}, {pipeline_mode = #tpu.pipeline_mode<synchronous>, transform_indices = @transform_1, window_bounds = array<i64: 1, 192>}, {pipeline_mode = #tpu.pipeline_mode<synchronous>, transform_indices = @transform_2, window_bounds = array<i64: 1, 192>}, {pipeline_mode = #tpu.pipeline_mode<synchronous>, transform_indices = @transform_3, window_bounds = array<i64: 192, 256>}, {pipeline_mode = #tpu.pipeline_mode<synchronous>, transform_indices = @transform_4, window_bounds = array<i64: 1, 256>}, {transform_indices = @transform_5, window_bounds = array<i64: 64, 192>}, {transform_indices = @transform_6, window_bounds = array<i64: 64, 128>}, {transform_indices = @transform_7, window_bounds = array<i64: 64, 128>}]} {
    %c0 = arith.constant 0 : index
    %c0_0 = arith.constant 0 : index
    %0 = vector.load %arg1[%c0, %c0_0] : memref<64x192xf32, #tpu.memory_space<vmem>>, vector<64x192xf32>
    %cst = arith.constant dense<0.000000e+00> : vector<64xf32>
    %1 = vector.multi_reduction <add>, %0, %cst [1] : vector<64x192xf32> to vector<64xf32>
    %2 = vector.shape_cast %1 : vector<64xf32> to vector<64x1xf32>
    %cst_1 = arith.constant 1.920000e+02 : f32
    %3 = vector.broadcast %cst_1 : f32 to vector<64x1xf32>
    %4 = arith.divf %2, %3 : vector<64x1xf32>
    %5 = vector.broadcast %4 : vector<64x1xf32> to vector<64x192xf32>
    %6 = arith.subf %0, %5 : vector<64x192xf32>
    %7 = arith.mulf %6, %6 : vector<64x192xf32>
    %cst_2 = arith.constant dense<0.000000e+00> : vector<64xf32>
    %8 = vector.multi_reduction <add>, %7, %cst_2 [1] : vector<64x192xf32> to vector<64xf32>
    %9 = vector.shape_cast %8 : vector<64xf32> to vector<64x1xf32>
    %cst_3 = arith.constant 1.920000e+02 : f32
    %10 = vector.broadcast %cst_3 : f32 to vector<64x1xf32>
    %11 = arith.divf %9, %10 : vector<64x1xf32>
    %12 = vector.broadcast %4 : vector<64x1xf32> to vector<64x192xf32>
    %13 = arith.subf %0, %12 : vector<64x192xf32>
    %cst_4 = arith.constant 9.99999974E-6 : f32
    %14 = vector.broadcast %cst_4 : f32 to vector<64x1xf32>
    %15 = arith.addf %11, %14 : vector<64x1xf32>
    %16 = math.rsqrt %15 : vector<64x1xf32>
    %17 = vector.broadcast %16 : vector<64x1xf32> to vector<64x192xf32>
    %18 = arith.mulf %13, %17 : vector<64x192xf32>
    %c0_5 = arith.constant 0 : index
    %c0_6 = arith.constant 0 : index
    %19 = vector.load %arg2[%c0_5, %c0_6] : memref<1x192xf32, #tpu.memory_space<vmem>>, vector<1x192xf32>
    %20 = vector.broadcast %19 : vector<1x192xf32> to vector<64x192xf32>
    %21 = arith.mulf %18, %20 : vector<64x192xf32>
    %c0_7 = arith.constant 0 : index
    %c0_8 = arith.constant 0 : index
    %22 = vector.load %arg3[%c0_7, %c0_8] : memref<1x192xf32, #tpu.memory_space<vmem>>, vector<1x192xf32>
    %23 = vector.broadcast %22 : vector<1x192xf32> to vector<64x192xf32>
    %24 = arith.addf %21, %23 : vector<64x192xf32>
    %c0_9 = arith.constant 0 : index
    %c0_10 = arith.constant 0 : index
    %25 = vector.load %arg6[%c0_9, %c0_10] : memref<64x192xf32, #tpu.memory_space<vmem>>, vector<64x192xf32>
    tpu.vector_store %arg6[%c0_9, %c0_10], %24 {strides = array<i32>} : memref<64x192xf32, #tpu.memory_space<vmem>>, vector<64x192xf32>,
    %26 = arith.truncf %24 : vector<64x192xf32> to vector<64x192xbf16>
    %c0_11 = arith.constant 0 : index
    %c0_12 = arith.constant 0 : index
    %27 = vector.load %arg4[%c0_11, %c0_12] : memref<192x256xbf16, #tpu.memory_space<vmem>>, vector<192x256xbf16>
    %cst_13 = arith.constant dense<0.000000e+00> : vector<64x256xf32>
    %28 = tpu.matmul %26, %27, %cst_13 {dimension_numbers = #tpu.dot_dimension_numbers<[1], [0], [0], [1], [0, 0, 1, 1], [], []>} : vector<64x192xbf16>, vector<192x256xbf16>, vector<64x256xf32> -> vector<64x256xf32>
    %c0_14 = arith.constant 0 : index
    %c0_15 = arith.constant 0 : index
    %29 = vector.load %arg5[%c0_14, %c0_15] : memref<1x256xf32, #tpu.memory_space<vmem>>, vector<1x256xf32>
    %30 = vector.broadcast %29 : vector<1x256xf32> to vector<64x256xf32>
    %31 = arith.addf %28, %30 : vector<64x256xf32>
    %32 = vector.extract_strided_slice %31 {offsets = [0, 0], sizes = [64, 128], strides = [1, 1]} : vector<64x256xf32> to vector<64x128xf32>
    %33 = arith.truncf %32 : vector<64x128xf32> to vector<64x128xbf16>
    %c0_16 = arith.constant 0 : index
    %c0_17 = arith.constant 0 : index
    %34 = vector.load %arg7[%c0_16, %c0_17] : memref<64x128xbf16, #tpu.memory_space<vmem>>, vector<64x128xbf16>
    tpu.vector_store %arg7[%c0_16, %c0_17], %33 {strides = array<i32>} : memref<64x128xbf16, #tpu.memory_space<vmem>>, vector<64x128xbf16>,
    %35 = vector.extract_strided_slice %31 {offsets = [0, 128], sizes = [64, 128], strides = [1, 1]} : vector<64x256xf32> to vector<64x128xf32>
    %36 = arith.truncf %35 : vector<64x128xf32> to vector<64x128xbf16>
    %c0_18 = arith.constant 0 : index
    %c0_19 = arith.constant 0 : index
    %37 = vector.load %arg8[%c0_18, %c0_19] : memref<64x128xbf16, #tpu.memory_space<vmem>>, vector<64x128xbf16>
    tpu.vector_store %arg8[%c0_18, %c0_19], %36 {strides = array<i32>} : memref<64x128xbf16, #tpu.memory_space<vmem>>, vector<64x128xbf16>,
    return
  }
  func.func @transform_0(%arg0: i32) -> (i32, i32) {
    %c0_i32 = arith.constant 0 : i32
    %c0_i32_0 = arith.constant 0 : i32
    return %arg0, %c0_i32 : i32, i32
  }
  func.func @transform_1(%arg0: i32) -> (i32, i32) {
    %c0_i32 = arith.constant 0 : i32
    %c0_i32_0 = arith.constant 0 : i32
    %c0_i32_1 = arith.constant 0 : i32
    return %c0_i32, %c0_i32_0 : i32, i32
  }
  func.func @transform_2(%arg0: i32) -> (i32, i32) {
    %c0_i32 = arith.constant 0 : i32
    %c0_i32_0 = arith.constant 0 : i32
    %c0_i32_1 = arith.constant 0 : i32
    return %c0_i32, %c0_i32_0 : i32, i32
  }
  func.func @transform_3(%arg0: i32) -> (i32, i32) {
    %c0_i32 = arith.constant 0 : i32
    %c0_i32_0 = arith.constant 0 : i32
    %c0_i32_1 = arith.constant 0 : i32
    return %c0_i32, %c0_i32_0 : i32, i32
  }
  func.func @transform_4(%arg0: i32) -> (i32, i32) {
    %c0_i32 = arith.constant 0 : i32
    %c0_i32_0 = arith.constant 0 : i32
    %c0_i32_1 = arith.constant 0 : i32
    return %c0_i32, %c0_i32_0 : i32, i32
  }
  func.func @transform_5(%arg0: i32) -> (i32, i32) {
    %c0_i32 = arith.constant 0 : i32
    %c0_i32_0 = arith.constant 0 : i32
    return %arg0, %c0_i32 : i32, i32
  }
  func.func @transform_6(%arg0: i32) -> (i32, i32) {
    %c0_i32 = arith.constant 0 : i32
    %c0_i32_0 = arith.constant 0 : i32
    return %arg0, %c0_i32 : i32, i32
  }
  func.func @transform_7(%arg0: i32) -> (i32, i32) {
    %c0_i32 = arith.constant 0 : i32
    %c0_i32_0 = arith.constant 0 : i32
    return %arg0, %c0_i32 : i32, i32
  }
}

</mosaic_0001>

<bundles_post_ra>
// kernel: tpu_custom_call.1
= control target key start
LH: loop header
LB: loop body
LE: loop exit
PB: predicated region body
PF: predicated region fallthrough
CT: control target
= control target key end

     0   :  { %s1928_s0 = inlined_call_operand.vmem [shape: f32[128,192], index: 0, kind: input, shape index: {}]   ;;  %s1929_s1 = inlined_call_operand.vmem [shape: f32[1,192], index: 1, kind: input, shape index: {}]   ;;  %s1930_s2 = inlined_call_operand.vmem [shape: f32[1,192], index: 2, kind: input, shape index: {}]   ;;  %s1931_s3 = inlined_call_operand.vmem [shape: bf16[192,256], index: 3, kind: input, shape index: {}]   ;;  %s1932_s4 = inlined_call_operand.vmem [shape: f32[1,256], index: 4, kind: input, shape index: {}]   ;;  %s1933_s5 = inlined_call_operand.vmem [shape: f32[128,192], index: 5, kind: output, shape index: {0}]   ;;  %s1934_s6 = inlined_call_operand.hbm [shape: bf16[128,128], index: 6, kind: output, shape index: {1}]   ;;  %s1935_s7 = inlined_call_operand.hbm [shape: bf16[128,128], index: 7, kind: output, shape index: {2}]  }
   0x1   :  { %1936 = sst [smem:[#allocation8_spill]] %s1928_s0 }
   0x2   :  { %13 = vsyncpa [#allocation3], 0 }
   0x3   :  { %15 = vsyncpa [#allocation3 + $0x1], 0 }
   0x4   :  { %16 = vsyncpa [#allocation5], 0 }
   0x5   :  { %18 = vsyncpa [#allocation5 + $0x1], 0  ;;  %s1427_s24 = smov 0   ;;  %s1429_s25 = smov 0  }
   0x6   :  { %s1431_s26 = smov 0   ;;  %s1433_s27 = smov 0  }
   0x7 LB: > { %s1448_s28 = sadd.s32 4294967295, %s1381_s27   ;;  %s1039_s29 = sadd.s32 4294967294, %s1381_s27   ;;  %s1381_s27 = sphi %s1433_s27, %s1943_s27   ;;  %s1377_s26 = sphi %s1431_s26, %s1942_s26   ;;  %s1373_s25 = sphi %s1429_s25, %s1941_s25   ;;  %s1369_s24 = sphi %s1427_s24, %s1940_s24  }
   0x8   : > { %s1452_s30 = sadd.s32 1, %s1381_s27   ;;  %s167_s8 = sadd.s32 1, %s1377_s26 }
   0x9   : > { %s164_s9 = ssub.s32 %s1381_s27, %s1452_s30  ;;  %p177_p0 = scmp.ne.s32.totalorder %s1377_s26, %s1373_s25 }
   0xa   : > { %p165_p1 = scmp.eq.s32.totalorder %s164_s9, 0  ;;  %p178_p2 = scmp.eq.s32.totalorder %s1448_s28, 1 }
   0xb   : > { %p183_p3 = scmp.ne.s32.totalorder %s1373_s25, %s1369_s24  ;;  %p184_p4 = scmp.eq.s32.totalorder %s1039_s29, 1 }
   0xc   : > { %s1463_s10 = scalar_select %p165_p1, %s1377_s26, %s167_s8  }
   0xd   : > { %p1465_p5 = por %p178_p2, %p177_p0  ;;  %p1469_p6 = por %p184_p4, %p183_p3 }
   0xe   : > { %p1042_p7 = scmp.ge.s32.totalorder %s1381_s27, 1  ;;  %p250_p8 = scmp.lt.s32.totalorder %s1381_s27, 3 }
  0x10   : > { %p251_p9 = pnand %p1042_p7, %p250_p8 }
  0x11   : > { %s1045_s13 = sshll.u32 (!%p251_p9), %s1448_s28, 3  ;;  %s1939_s0 = sld [smem:[#allocation8_spill]] (!%p251_p9) }
  0x12   : > { %254 = sbr.rel (%p251_p9) target bundleno = 596 (0x254), region = 40  ;;  %p295_p10 = scmp.lt.s32.totalorder (!%p251_p9), %s1045_s13, 15 }
  0x13   : > { %s1827_s8 = sand.u32 (!%p251_p9), 1, %s1373_s25   ;;  %s1121_s18 = sshll.u32 (!%p251_p9), %s1448_s28, 9 }
  0x14   : > { %s1043_s9 = sshll.u32 (!%p251_p9), %s1827_s8, 5  ;;  %s1850_s28 = scalar_lea.hbm (!%p251_p9), %s1934_s6, %s1121_s18 }
  0x15   : > { %s1832_s15 = scalar_lea.vmem (!%p251_p9), [#allocation2], %s1043_s9  ;;  %s1835_s16 = scalar_lea.vmem (!%p251_p9), [#allocation4], %s1043_s9 }
  0x16   : > { %s919_s19 = sshll.u32 (!%p251_p9), %s1835_s16, 4  ;;  %s1383_s9 = smov (!%p251_p9), [#allocation2]   ;;  %s1852_s19 = int_to_ptr.vmem [resolvable:$true] %s919_s19 }
  0x17   : > { %s1945_s13 = smov (!%p295_p10, %s1045_s13), 15  ;;  %vm327_vm0 = vcmask 523264   ;;  %v1239_v32 = vld [vmem:[%s1931_s3 + $0x74] ss:$8 sps:$4 sm:$0xff]   ;;  %v1241_v33 = vld [vmem:[%s1931_s3 + $0x70] ss:$8 sps:$4 sm:$0xff]  }
  0x18   : > { %s1103_s14 = sshll.u32 %s1945_s13, 4  ;;  %v1242_v34 = vld [vmem:[%s1931_s3 + $0x64] ss:$8 sps:$4 sm:$0xff]   ;;  %721 = vmatprep.subr.bf16.mxu0 %v1239_v32  ;;  %1169 = vmatprep.subr.bf16.mxu1 %v1239_v32  ;;  %v1244_v35 = vld [vmem:[%s1931_s3 + $0x60] ss:$8 sps:$4 sm:$0xff]   ;;  %s881_s13 = scalar_lea.sflag [#allocation3], %s1827_s8 }
  0x19   : > { %s1484_s17 = scalar_lea.vmem %s1939_s0, %s1103_s14  ;;  %722 = vmatpush1.bf16.msra.mxu0 %v1241_v33  ;;  %1181 = vmatpush1.bf16.msra.mxu1 %v1241_v33  ;;  %v1245_v36 = vld [vmem:[%s1931_s3 + $0x54] ss:$8 sps:$4 sm:$0xff]   ;;  %v1247_v37 = vld [vmem:[%s1931_s3 + $0x50] ss:$8 sps:$4 sm:$0xff]   ;;  %v1248_v38 = vld [vmem:[%s1931_s3 + $0x44] ss:$8 sps:$4 sm:$0xff]   ;;  %s1749_s29 = scalar_lea.vmem %s1933_s5, %s1103_s14 }
  0x1a   : > { %v1487_v0 = vld [vmem:[%s1484_s17] sm:$0xff]  ;;  %v1490_v1 = vld [vmem:[%s1484_s17 + $0x8] sm:$0xff]  ;;  %v1501_v5 = vld [vmem:[%s1484_s17 + $0x10] sm:$0xff]  ;;  %723 = vmatprep.subr.bf16.mxu0 %v1242_v34  ;;  %1170 = vmatprep.subr.bf16.mxu1 %v1242_v34  ;;  %s1295_s0 = sshll.u32 %s1383_s9, 4  ;;  %s1296_s0 = int_to_ptr.vmem [resolvable:$false] %s1295_s0 }
  0x1b   : > { %v1493_v2 = vld [vmem:[%s1484_s17 + $0x40] sm:$0xff]  ;;  %v328_v3 = vsel %vm327_vm0, %v1490_v1, 0.0  ;;  %v1498_v4 = vld [vmem:[%s1484_s17 + $0x48] sm:$0xff]  ;;  %v1504_v6 = vld [vmem:[%s1484_s17 + $0x18] sm:$0xff]  ;;  %s1297_s20 = scalar_lea.vmem %s1296_s0, 1024 }
  0x1c   : > { %v329_v7 = vadd.f32 %v328_v3, %v1487_v0  ;;  %v344_v8 = vsel %vm327_vm0, %v1498_v4, 0.0  ;;  %v332_v9 = vsel %vm327_vm0, %v1504_v6, 0.0  ;;  %v1512_v10 = vld [vmem:[%s1484_s17 + $0x50] sm:$0xff]  ;;  %v1515_v11 = vld [vmem:[%s1484_s17 + $0x58] sm:$0xff]  ;;  %v1521_v14 = vld [vmem:[%s1484_s17 + $0x28] sm:$0xff] }
  0x1d   : > { %v345_v12 = vadd.f32 %v344_v8, %v1493_v2  ;;  %v348_v13 = vsel %vm327_vm0, %v1515_v11, 0.0  ;;  %v1524_v15 = vld [vmem:[%s1484_s17 + $0x38] sm:$0xff]  ;;  %v333_v16 = vadd.f32 %v332_v9, %v1501_v5  ;;  %v1529_v18 = vld [vmem:[%s1484_s17 + $0x20] sm:$0xff]  ;;  %v336_v19 = vsel %vm327_vm0, %v1521_v14, 0.0  ;;  %v1534_v20 = vld [vmem:[%s1484_s17 + $0x30] sm:$0xff]  ;;  %724 = vmatpush1.bf16.msra.mxu0 %v1244_v35  ;;  %1182 = vmatpush1.bf16.msra.mxu1 %v1244_v35 }
  0x1e   : > { %330 = vadd.xlane.f32.xlu0 %v329_v7  ;;  %v349_v17 = vadd.f32 %v348_v13, %v1512_v10  ;;  %v340_v21 = vsel %vm327_vm0, %v1524_v15, 0.0  ;;  %v1539_v22 = vld [vmem:[%s1484_s17 + $0x68] sm:$0xff]  ;;  %v1542_v23 = vld [vmem:[%s1484_s17 + $0x78] sm:$0xff]  ;;  %v337_v24 = vadd.f32 %v336_v19, %v1529_v18  ;;  %v1547_v26 = vld [vmem:[%s1484_s17 + $0x60] sm:$0xff]  ;;  %725 = vmatprep.subr.bf16.mxu0 %v1245_v36 }
  0x1f   : > { %346 = vadd.xlane.f32.xlu1 %v345_v12  ;;  %v341_v25 = vadd.f32 %v340_v21, %v1534_v20  ;;  %v352_v27 = vsel %vm327_vm0, %v1539_v22, 0.0  ;;  %v1552_v28 = vld [vmem:[%s1484_s17 + $0x70] sm:$0xff]  ;;  %v356_v29 = vsel %vm327_vm0, %v1542_v23, 0.0  ;;  %1171 = vmatprep.subr.bf16.mxu1 %v1245_v36  ;;  %v1250_v39 = vld [vmem:[%s1931_s3 + $0x40] ss:$8 sps:$4 sm:$0xff]   ;;  %s903_s17 = sshll.u32 %s1832_s15, 4  ;;  %s1842_s17 = int_to_ptr.vmem [resolvable:$true] %s903_s17 }
  0x20   : > { %v353_v30 = vadd.f32 %v352_v27, %v1547_v26  ;;  %v357_v31 = vadd.f32 %v356_v29, %v1552_v28  ;;  %v1251_v40 = vld [vmem:[%s1931_s3 + $0x34] ss:$8 sps:$4 sm:$0xff]   ;;  %s1291_s14 = scalar_lea.vmem %s1842_s17, 512  ;;  %p1298_p0 = scmp.lt.s32.totalorder %s1842_s17, %s1296_s0 }
  0x21   : > { %726 = vmatpush1.bf16.msra.mxu0 %v1247_v37  ;;  %1183 = vmatpush1.bf16.msra.mxu1 %v1247_v37  ;;  %p1292_p11 = scmp.ne.s32.totalorder %s1842_s17, %s1291_s14  ;;  %p1299_p1 = scmp.lt.s32.totalorder %s1297_s20, %s1291_s14 }
  0x22   : > { %334 = vadd.xlane.f32.xlu0 %v333_v16  ;;  %727 = vmatprep.subr.bf16.mxu0 %v1248_v38 }
  0x23   : > { %350 = vadd.xlane.f32.xlu1 %v349_v17  ;;  %1172 = vmatprep.subr.bf16.mxu1 %v1248_v38  ;;  %p1293_p12 = pnand %p1292_p11, %p1465_p5  ;;  %p1300_p2 = por %p1299_p1, %p1298_p0 }
  0x25   : > { %728 = vmatpush1.bf16.msra.mxu0 %v1250_v39  ;;  %1184 = vmatpush1.bf16.msra.mxu1 %v1250_v39  ;;  %p1294_p13 = pneg %p1293_p12 }
  0x26   : > { %338 = vadd.xlane.f32.xlu0 %v337_v24  ;;  %729 = vmatprep.subr.bf16.mxu0 %v1251_v40 }
  0x27   : > { %342 = vadd.xlane.f32.xlu1 %v341_v25  ;;  %1173 = vmatprep.subr.bf16.mxu1 %v1251_v40  ;;  %p1301_p3 = pnand %p1300_p2, %p1294_p13 }
  0x2a   : > { %354 = vadd.xlane.f32.xlu0 %v353_v30 }
  0x2b   : > { %358 = vadd.xlane.f32.xlu1 %v357_v31 }
  0xa7   : > { %v331_v41 = vpop.xlane.xlu0 %330 }
  0xa8   : > { %v361_v42 = vmul.f32 0.0052083335, %v331_v41  ;;  %v347_v43 = vpop.xlane.xlu1 %346  ;;  %v1254_v41 = vld [vmem:[%s1931_s3 + $0x24] ss:$8 sps:$4 sm:$0xff]  }
  0xa9   : > { %v365_v44 = vmul.f32 0.0052083335, %v347_v43  ;;  %v1256_v43 = vld [vmem:[%s1931_s3 + $0x20] ss:$8 sps:$4 sm:$0xff]  }
  0xaa   : > { %v1586_v45 = vsub.f32 %v1487_v0, %v361_v42  ;;  %v1589_v46 = vsub.f32 %v1490_v1, %v361_v42 }
  0xab   : > { %v1592_v47 = vsub.f32 %v1493_v2, %v365_v44  ;;  %v1595_v48 = vsub.f32 %v1498_v4, %v365_v44  ;;  %v335_v49 = vpop.xlane.xlu0 %334  ;;  %v1257_v44 = vld [vmem:[%s1931_s3 + $0x14] ss:$8 sps:$4 sm:$0xff]  }
  0xac   : > { %v362_v50 = vmul.f32 0.0052083335, %v335_v49  ;;  %v351_v51 = vpop.xlane.xlu1 %350  ;;  %v385_v52 = vmul.f32 %v1586_v45, %v1586_v45  ;;  %v386_v53 = vmul.f32 %v1589_v46, %v1589_v46  ;;  %v1259_v49 = vld [vmem:[%s1931_s3 + $0x10] ss:$8 sps:$4 sm:$0xff]  }
  0xad   : > { %v366_v54 = vmul.f32 0.0052083335, %v351_v51  ;;  %v393_v55 = vmul.f32 %v1592_v47, %v1592_v47  ;;  %v394_v56 = vmul.f32 %v1595_v48, %v1595_v48  ;;  %v1262_v51 = vld [vmem:[%s1931_s3] ss:$8 sps:$4 sm:$0xff]  }
  0xae   : > { %v1606_v57 = vsub.f32 %v1501_v5, %v362_v50  ;;  %v1609_v58 = vsub.f32 %v1504_v6, %v362_v50  ;;  %v401_v59 = vsel %vm327_vm0, %v386_v53, 0.0  ;;  %v1260_v50 = vld [vmem:[%s1931_s3 + $0x4] ss:$8 sps:$4 sm:$0xff]   ;;  %v1265_v53 = vld [vmem:[%s1931_s3 + $0xb0] ss:$8 sps:$4 sm:$0xff]  }
  0xaf   : > { %v1613_v60 = vsub.f32 %v1512_v10, %v366_v54  ;;  %v1616_v61 = vsub.f32 %v1515_v11, %v366_v54  ;;  %v339_v62 = vpop.xlane.xlu0 %338  ;;  %v402_v63 = vadd.f32 %v401_v59, %v385_v52  ;;  %v417_v0 = vsel %vm327_vm0, %v394_v56, 0.0  ;;  %v1263_v52 = vld [vmem:[%s1931_s3 + $0xb4] ss:$8 sps:$4 sm:$0xff]   ;;  %v1266_v54 = vld [vmem:[%s1931_s3 + $0xa4] ss:$8 sps:$4 sm:$0xff]  }
  0xb0   : > { %v363_v1 = vmul.f32 0.0052083335, %v339_v62  ;;  %v343_v2 = vpop.xlane.xlu1 %342  ;;  %v387_v3 = vmul.f32 %v1606_v57, %v1606_v57  ;;  %v388_v4 = vmul.f32 %v1609_v58, %v1609_v58  ;;  %v418_v6 = vadd.f32 %v417_v0, %v393_v55  ;;  %v1268_v55 = vld [vmem:[%s1931_s3 + $0xa0] ss:$8 sps:$4 sm:$0xff]   ;;  %v1269_v56 = vld [vmem:[%s1931_s3 + $0x94] ss:$8 sps:$4 sm:$0xff]  }
  0xb1   : > { %403 = vadd.xlane.f32.xlu0 %v402_v63  ;;  %v364_v5 = vmul.f32 0.0052083335, %v343_v2  ;;  %v395_v7 = vmul.f32 %v1613_v60, %v1613_v60  ;;  %v396_v8 = vmul.f32 %v1616_v61, %v1616_v61  ;;  %v1271_v59 = vld [vmem:[%s1931_s3 + $0x90] ss:$8 sps:$4 sm:$0xff]   ;;  %v1272_v62 = vld [vmem:[%s1931_s3 + $0x84] ss:$8 sps:$4 sm:$0xff]  }
  0xb2   : > { %v1628_v9 = vsub.f32 %v1529_v18, %v363_v1  ;;  %v1631_v10 = vsub.f32 %v1521_v14, %v363_v1  ;;  %v405_v11 = vsel %vm327_vm0, %v388_v4, 0.0  ;;  %v1274_v63 = vld [vmem:[%s1931_s3 + $0x80] ss:$8 sps:$4 sm:$0xff]  }
  0xb3   : > { %v1635_v12 = vsub.f32 %v1534_v20, %v364_v5  ;;  %v1638_v13 = vsub.f32 %v1524_v15, %v364_v5  ;;  %v355_v16 = vpop.xlane.xlu0 %354  ;;  %v406_v17 = vadd.f32 %v405_v11, %v387_v3  ;;  %v421_v19 = vsel %vm327_vm0, %v396_v8, 0.0 }
  0xb4   : > { %v367_v21 = vmul.f32 0.0052083335, %v355_v16  ;;  %v359_v24 = vpop.xlane.xlu1 %358  ;;  %v389_v18 = vmul.f32 %v1628_v9, %v1628_v9  ;;  %v390_v14 = vmul.f32 %v1631_v10, %v1631_v10  ;;  %v422_v20 = vadd.f32 %v421_v19, %v395_v7 }
  0xb5   : > { %419 = vadd.xlane.f32.xlu0 %v418_v6  ;;  %407 = vadd.xlane.f32.xlu1 %v406_v17  ;;  %v368_v25 = vmul.f32 0.0052083335, %v359_v24  ;;  %v391_v15 = vmul.f32 %v1635_v12, %v1635_v12  ;;  %v392_v27 = vmul.f32 %v1638_v13, %v1638_v13  ;;  %v475_v5 = vlaneseq }
  0xb6   : > { %v1650_v29 = vsub.f32 %v1547_v26, %v367_v21  ;;  %v1653_v30 = vsub.f32 %v1539_v22, %v367_v21  ;;  %v409_v31 = vsel %vm327_vm0, %v390_v14, 0.0 }
  0xb7   : > { %v1657_v32 = vsub.f32 %v1552_v28, %v368_v25  ;;  %v1660_v33 = vsub.f32 %v1542_v23, %v368_v25  ;;  %v410_v34 = vadd.f32 %v409_v31, %v389_v18  ;;  %v413_v35 = vsel %vm327_vm0, %v392_v27, 0.0  ;;  %v1253_v23 = vld [vmem:[%s1931_s3 + $0x30] ss:$8 sps:$4 sm:$0xff]  }
  0xb8   : > { %v397_v36 = vmul.f32 %v1650_v29, %v1650_v29  ;;  %v398_v26 = vmul.f32 %v1653_v30, %v1653_v30  ;;  %v414_v22 = vadd.f32 %v413_v35, %v391_v15  ;;  %730 = vmatpush1.bf16.msra.mxu0 %v1253_v23  ;;  %1185 = vmatpush1.bf16.msra.mxu1 %v1253_v23  ;;  %v476_v19 = vshrl.u32 %v475_v5, 7  ;;  %v473_v35 = vld [vmem:[%s1929_s1] sm:$0x3] }
  0xb9   : > { %423 = vadd.xlane.f32.xlu1 %v422_v20  ;;  %411 = vadd.xlane.f32.xlu0 %v410_v34  ;;  %v399_v37 = vmul.f32 %v1657_v32, %v1657_v32  ;;  %v400_v28 = vmul.f32 %v1660_v33, %v1660_v33 }
  0xba   : > { %v425_v38 = vsel %vm327_vm0, %v398_v26, 0.0  ;;  %731 = vmatprep.subr.bf16.mxu0 %v1254_v41  ;;  %1174 = vmatprep.subr.bf16.mxu1 %v1254_v41  ;;  %v1718_v15 = vsub.s32 0, %v476_v19  ;;  %v1720_v34 = vsub.s32 1, %v476_v19 }
  0xbb   : > { %v426_v39 = vadd.f32 %v425_v38, %v397_v36  ;;  %v429_v40 = vsel %vm327_vm0, %v400_v28, 0.0 }
  0xbc   : > { %v430_v42 = vadd.f32 %v429_v40, %v399_v37  ;;  %732 = vmatpush1.bf16.msra.mxu0 %v1256_v43  ;;  %1186 = vmatpush1.bf16.msra.mxu1 %v1256_v43  ;;  %v1729_v23 = vrot.slane %v473_v35, %v1718_v15  ;;  %v1732_v38 = vrot.slane %v473_v35, %v1720_v34 }
  0xbd   : > { %415 = vadd.xlane.f32.xlu1 %v414_v22  ;;  %427 = vadd.xlane.f32.xlu0 %v426_v39  ;;  %v501_v22 = vld [vmem:[%s1930_s2] sm:$0x3] }
  0xbe   : > { %733 = vmatprep.subr.bf16.mxu0 %v1257_v44  ;;  %1175 = vmatprep.subr.bf16.mxu1 %v1257_v44  ;;  %v1735_v40 = vrot.slane %v501_v22, %v1718_v15  ;;  %v1739_v43 = vrot.slane %v501_v22, %v1720_v34 }
  0xc0   : > { %734 = vmatpush1.bf16.msra.mxu0 %v1259_v49  ;;  %1187 = vmatpush1.bf16.msra.mxu1 %v1259_v49 }
  0xc1   : > { %431 = vadd.xlane.f32.xlu1 %v430_v42  ;;  %735 = vmatprep.subr.bf16.mxu0 %v1260_v50 }
  0xc2   : > { %1176 = vmatprep.subr.bf16.mxu1 %v1260_v50 }
  0xc4   : > { %736 = vmatpush1.bf16.msra.mxu0 %v1262_v51  ;;  %1188 = vmatpush1.bf16.msra.mxu1 %v1262_v51 }
  0xc5   : > { %745 = vmatprep.subr.bf16.mxu0 %v1263_v52  ;;  %1177 = vmatprep.subr.bf16.mxu1 %v1263_v52 }
  0xc8   : > { %746 = vmatpush2.bf16.msra.mxu0 %v1265_v53  ;;  %1189 = vmatpush2.bf16.msra.mxu1 %v1265_v53 }
  0xc9   : > { %747 = vmatprep.subr.bf16.mxu0 %v1266_v54  ;;  %1178 = vmatprep.subr.bf16.mxu1 %v1266_v54 }
  0xcc   : > { %748 = vmatpush2.bf16.msra.mxu0 %v1268_v55  ;;  %1190 = vmatpush2.bf16.msra.mxu1 %v1268_v55 }
  0xcd   : > { %749 = vmatprep.subr.bf16.mxu0 %v1269_v56  ;;  %1179 = vmatprep.subr.bf16.mxu1 %v1269_v56 }
  0xd0   : > { %750 = vmatpush2.bf16.msra.mxu0 %v1271_v59  ;;  %1191 = vmatpush2.bf16.msra.mxu1 %v1271_v59 }
  0xd1   : > { %751 = vmatprep.subr.bf16.mxu0 %v1272_v62  ;;  %1180 = vmatprep.subr.bf16.mxu1 %v1272_v62 }
  0xd4   : > { %752 = vmatpush2.bf16.msra.mxu0 %v1274_v63  ;;  %1192 = vmatpush2.bf16.msra.mxu1 %v1274_v63 }
 0x13a   : > { %v404_v0 = vpop.xlane.xlu0 %403 }
 0x13b   : > { %v433_v1 = vmul.f32 0.0052083335, %v404_v0 }
 0x13d   : > { %v441_v2 = vadd.f32 1e-05, %v433_v1 }
 0x13e   : > { %v408_v3 = vpop.xlane.xlu1 %407  ;;  %v420_v4 = vpop.xlane.xlu0 %419 }
 0x13f   : > { %1275 = vrsqrt.f32 %v441_v2  ;;  %v434_v6 = vmul.f32 0.0052083335, %v408_v3  ;;  %v437_v7 = vmul.f32 0.0052083335, %v420_v4 }
 0x141   : > { %v442_v8 = vadd.f32 1e-05, %v434_v6  ;;  %v445_v11 = vadd.f32 1e-05, %v437_v7 }
 0x142   : > { %v424_v16 = vpop.xlane.xlu1 %423  ;;  %v412_v17 = vpop.xlane.xlu0 %411 }
 0x143   : > { %1277 = vrsqrt.f32 %v442_v8  ;;  %v438_v21 = vmul.f32 0.0052083335, %v424_v16  ;;  %v435_v24 = vmul.f32 0.0052083335, %v412_v17 }
 0x144   : > { %1279 = vrsqrt.f32 %v445_v11 }
 0x145   : > { %v446_v18 = vadd.f32 1e-05, %v438_v21  ;;  %v443_v14 = vadd.f32 1e-05, %v435_v24 }
 0x146   : > { %v416_v25 = vpop.xlane.xlu1 %415  ;;  %v428_v20 = vpop.xlane.xlu0 %427 }
 0x147   : > { %1281 = vrsqrt.f32 %v446_v18  ;;  %v436_v27 = vmul.f32 0.0052083335, %v416_v25  ;;  %v439_v31 = vmul.f32 0.0052083335, %v428_v20 }
 0x148   : > { %1283 = vrsqrt.f32 %v443_v14 }
 0x149   : > { %v444_v36 = vadd.f32 1e-05, %v436_v27  ;;  %v447_v26 = vadd.f32 1e-05, %v439_v31 }
 0x14a   : > { %v432_v37 = vpop.xlane.xlu1 %431 }
 0x14b   : > { %1285 = vrsqrt.f32 %v444_v36  ;;  %v440_v28 = vmul.f32 0.0052083335, %v432_v37 }
 0x14c   : > { %v1276_v39 = vpop.eup %1275  ;;  %1287 = vrsqrt.f32 %v447_v26 }
 0x14d   : > { %v448_v41 = vadd.f32 1e-05, %v440_v28  ;;  %v458_v42 = vmul.f32 %v1276_v39, %v1589_v46  ;;  %v457_v44 = vmul.f32 %v1276_v39, %v1586_v45 }
 0x14f   : > { %1289 = vrsqrt.f32 %v448_v41  ;;  %v486_v49 = vmul.f32 %v1732_v38, %v458_v42  ;;  %v485_v50 = vmul.f32 %v1729_v23, %v457_v44 }
 0x150   : > { %v1278_v51 = vpop.eup %1277 }
 0x151   : > { %v1280_v46 = vpop.eup %1279  ;;  %v460_v52 = vmul.f32 %v1278_v51, %v1609_v58  ;;  %v514_v53 = vadd.f32 %v1739_v43, %v486_v49  ;;  %v459_v45 = vmul.f32 %v1278_v51, %v1606_v57  ;;  %v513_v54 = vadd.f32 %v1735_v40, %v485_v50 }
 0x152   : > { %v466_v55 = vmul.f32 %v1280_v46, %v1595_v48  ;;  %v465_v56 = vmul.f32 %v1280_v46, %v1592_v47 }
 0x153   : > { %v488_v59 = vmul.f32 %v1732_v38, %v460_v52  ;;  %530 = vst.msk [vmem:[%s1749_s29 + $0x8] sm:$0xff] %vm327_vm0, %v514_v53  ;;  %v487_v62 = vmul.f32 %v1729_v23, %v459_v45  ;;  %529 = vst [vmem:[%s1749_s29] sm:$0xff] %v513_v54 }
 0x154   : > { %v1282_v58 = vpop.eup %1281  ;;  %v494_v63 = vmul.f32 %v1732_v38, %v466_v55  ;;  %v493_v57 = vmul.f32 %v1729_v23, %v465_v56 }
 0x155   : > { %v1284_v0 = vpop.eup %1283  ;;  %v516_v48 = vadd.f32 %v1739_v43, %v488_v59  ;;  %v515_v47 = vadd.f32 %v1735_v40, %v487_v62  ;;  %v468_v1 = vmul.f32 %v1282_v58, %v1616_v61  ;;  %v467_v2 = vmul.f32 %v1282_v58, %v1613_v60 }
 0x156   : > { %v522_v3 = vadd.f32 %v1739_v43, %v494_v63  ;;  %v521_v4 = vadd.f32 %v1735_v40, %v493_v57  ;;  %v462_v5 = vmul.f32 %v1284_v0, %v1631_v10  ;;  %v461_v6 = vmul.f32 %v1284_v0, %v1628_v9 }
 0x157   : > { %532 = vst.msk [vmem:[%s1749_s29 + $0x18] sm:$0xff] %vm327_vm0, %v516_v48  ;;  %v546_v7 = vpack.c.bf16 %v516_v48, %v514_v53  ;;  %531 = vst [vmem:[%s1749_s29 + $0x10] sm:$0xff] %v515_v47  ;;  %v545_v8 = vpack.c.bf16 %v515_v47, %v513_v54  ;;  %v496_v11 = vmul.f32 %v1732_v38, %v468_v1 }
 0x158   : > { %v495_v16 = vmul.f32 %v1729_v23, %v467_v2  ;;  %v1286_v61 = vpop.eup %1285  ;;  %538 = vst.msk [vmem:[%s1749_s29 + $0x48] sm:$0xff] %vm327_vm0, %v522_v3  ;;  %537 = vst [vmem:[%s1749_s29 + $0x40] sm:$0xff] %v521_v4  ;;  %v490_v60 = vmul.f32 %v1732_v38, %v462_v5  ;;  %v489_v10 = vmul.f32 %v1729_v23, %v461_v6 }
 0x159   : > { %v1288_v9 = vpop.eup %1287  ;;  %1075 = vmatprep.mubr.msk.bf16.mxu0 %vm327_vm0, %v546_v7  ;;  %v524_v17 = vadd.f32 %v1739_v43, %v496_v11  ;;  %v464_v21 = vmul.f32 %v1286_v61, %v1638_v13  ;;  %v463_v24 = vmul.f32 %v1286_v61, %v1635_v12 }
 0x15a   : > { %v523_v19 = vadd.f32 %v1735_v40, %v495_v16  ;;  %754 = vmatmul.mubr.bf16.vlgmr.msra.gmra.mxu0 %v545_v8  ;;  %v518_v18 = vadd.f32 %v1739_v43, %v490_v60  ;;  %v517_v14 = vadd.f32 %v1735_v40, %v489_v10  ;;  %v470_v25 = vmul.f32 %v1288_v9, %v1653_v30 }
 0x15b   : > { %v469_v20 = vmul.f32 %v1288_v9, %v1650_v29  ;;  %540 = vst.msk [vmem:[%s1749_s29 + $0x58] sm:$0xff] %vm327_vm0, %v524_v17  ;;  %v550_v27 = vpack.c.bf16 %v524_v17, %v522_v3  ;;  %v492_v35 = vmul.f32 %v1732_v38, %v464_v21  ;;  %v491_v13 = vmul.f32 %v1729_v23, %v463_v24 }
 0x15c   : > { %539 = vst [vmem:[%s1749_s29 + $0x50] sm:$0xff] %v523_v19  ;;  %v549_v31 = vpack.c.bf16 %v523_v19, %v521_v4  ;;  %v1290_v12 = vpop.eup %1289  ;;  %534 = vst.msk [vmem:[%s1749_s29 + $0x28] sm:$0xff] %vm327_vm0, %v518_v18  ;;  %v498_v36 = vmul.f32 %v1732_v38, %v470_v25 }
 0x15d   : > { %533 = vst [vmem:[%s1749_s29 + $0x20] sm:$0xff] %v517_v14  ;;  %v497_v29 = vmul.f32 %v1729_v23, %v469_v20  ;;  %1077 = vmatprep.mubr.msk.bf16.mxu1 %vm327_vm0, %v550_v27  ;;  %v520_v30 = vadd.f32 %v1739_v43, %v492_v35  ;;  %v519_v26 = vadd.f32 %v1735_v40, %v491_v13 }
 0x15e   : > { %v472_v22 = vmul.f32 %v1290_v12, %v1660_v33  ;;  %v471_v37 = vmul.f32 %v1290_v12, %v1657_v32  ;;  %774 = vmatmul.mubr.bf16.vlgmr.msra.gmra.mxu1 %v549_v31  ;;  %v526_v28 = vadd.f32 %v1739_v43, %v498_v36 }
 0x15f   : > { %v525_v39 = vadd.f32 %v1735_v40, %v497_v29  ;;  %536 = vst.msk [vmem:[%s1749_s29 + $0x38] sm:$0xff] %vm327_vm0, %v520_v30  ;;  %v548_v41 = vpack.c.bf16 %v520_v30, %v518_v18  ;;  %535 = vst [vmem:[%s1749_s29 + $0x30] sm:$0xff] %v519_v26  ;;  %v547_v42 = vpack.c.bf16 %v519_v26, %v517_v14 }
 0x160   : > { %v500_v44 = vmul.f32 %v1732_v38, %v472_v22  ;;  %v499_v49 = vmul.f32 %v1729_v23, %v471_v37  ;;  %542 = vst.msk [vmem:[%s1749_s29 + $0x68] sm:$0xff] %vm327_vm0, %v526_v28  ;;  %v577_v23 = vld [vmem:[%s1932_s4] sm:$0x3] }
 0x161   : > { %541 = vst [vmem:[%s1749_s29 + $0x60] sm:$0xff] %v525_v39  ;;  %1076 = vmatprep.mubr.msk.bf16.mxu0 %vm327_vm0, %v548_v41  ;;  %v586_v46 = vrot.slane %v577_v23, %v1720_v34 }
 0x162   : > { %v528_v32 = vadd.f32 %v1739_v43, %v500_v44  ;;  %v527_v33 = vadd.f32 %v1735_v40, %v499_v49  ;;  %764 = vmatmul.mubr.bf16.gmra.mxu0 %v547_v42  ;;  %v582_v43 = vrot.slane %v577_v23, %v1718_v15 }
 0x164   : > { %544 = vst.msk [vmem:[%s1749_s29 + $0x78] sm:$0xff] %vm327_vm0, %v528_v32  ;;  %v552_v50 = vpack.c.bf16 %v528_v32, %v526_v28  ;;  %543 = vst [vmem:[%s1749_s29 + $0x70] sm:$0xff] %v527_v33  ;;  %v551_v51 = vpack.c.bf16 %v527_v33, %v525_v39  ;;  %s1858_s29 = scalar_lea.hbm %s1935_s7, %s1121_s18 }
 0x166   : > { %1078 = vmatprep.mubr.msk.bf16.mxu1 %vm327_vm0, %v552_v50 }
 0x167   : > { %784 = vmatmul.mubr.bf16.gmra.mxu1 %v551_v51 }
 0x21a   : > { %v755_v38 = vpop.f32.mrf.mxu0 }
 0x21b   : > { %v756_v45 = vadd.f32 %v755_v38, %v582_v43 }
 0x21c   : > { %v757_v40 = vpop.f32.mrf.mxu0 }
 0x21d   : > { %v758_v59 = vadd.f32 %v757_v40, %v586_v46 }
 0x21e   : > { %v759_v52 = vpop.f32.mrf.mxu0  ;;  %v775_v53 = vpop.f32.mrf.mxu1 }
 0x21f   : > { %v760_v54 = vadd.f32 %v759_v52, %v582_v43  ;;  %v776_v15 = vadd.f32 %v775_v53, %v582_v43 }
 0x220   : > { %v761_v55 = vpop.f32.mrf.mxu0  ;;  %v777_v56 = vpop.f32.mrf.mxu1 }
 0x221   : > { %v1126_v62 = vpack.c.bf16 %v760_v54, %v756_v45  ;;  %v762_v58 = vadd.f32 %v761_v55, %v586_v46  ;;  %v778_v1 = vadd.f32 %v777_v56, %v586_v46 }
 0x222   : > { %v765_v63 = vpop.f32.mrf.mxu0  ;;  %v779_v57 = vpop.f32.mrf.mxu1 }
 0x223   : > { %1127 = vst [vmem:[%s1832_s15] sm:$0xff] %v1126_v62   ;;  %v1146_v34 = vpack.c.bf16 %v762_v58, %v758_v59  ;;  %v780_v0 = vadd.f32 %v779_v57, %v582_v43  ;;  %v766_v6 = vadd.f32 %v765_v63, %v582_v43 }
 0x224   : > { %v767_v48 = vpop.f32.mrf.mxu0  ;;  %v781_v47 = vpop.f32.mrf.mxu1 }
 0x225   : > { %1147 = vst [vmem:[%s1835_s16] sm:$0xff] %v1146_v34   ;;  %v1136_v2 = vpack.c.bf16 %v780_v0, %v776_v15  ;;  %v782_v3 = vadd.f32 %v781_v47, %v586_v46  ;;  %v768_v61 = vadd.f32 %v767_v48, %v586_v46 }
 0x226   : > { %v769_v4 = vpop.f32.mrf.mxu0 }
 0x227   : > { %v785_v5 = vpop.f32.mrf.mxu1  ;;  %1164 = vst [vmem:[%s1832_s15 + $0x10] sm:$0xff] %v1136_v2   ;;  %v1156_v7 = vpack.c.bf16 %v782_v3, %v778_v1  ;;  %v770_v8 = vadd.f32 %v769_v4, %v582_v43 }
 0x228   : > { %v771_v11 = vpop.f32.mrf.mxu0  ;;  %v786_v17 = vadd.f32 %v785_v5, %v582_v43 }
 0x229   : > { %v787_v16 = vpop.f32.mrf.mxu1  ;;  %1167 = vst [vmem:[%s1835_s16 + $0x10] sm:$0xff] %v1156_v7   ;;  %v1131_v60 = vpack.c.bf16 %v770_v8, %v766_v6  ;;  %v772_v10 = vadd.f32 %v771_v11, %v586_v46 }
 0x22a   : > { %v788_v18 = vadd.f32 %v787_v16, %v586_v46 }
 0x22b   : > { %v789_v9 = vpop.f32.mrf.mxu1  ;;  %1163 = vst [vmem:[%s1832_s15 + $0x8] sm:$0xff] %v1131_v60   ;;  %v1151_v19 = vpack.c.bf16 %v772_v10, %v768_v61 }
 0x22c   : > { %v790_v21 = vadd.f32 %v789_v9, %v582_v43 }
 0x22d   : > { %v791_v24 = vpop.f32.mrf.mxu1  ;;  %1166 = vst [vmem:[%s1835_s16 + $0x8] sm:$0xff] %v1151_v19  }
 0x22e   : > { %v1141_v14 = vpack.c.bf16 %v790_v21, %v786_v17  ;;  %v792_v25 = vadd.f32 %v791_v24, %v586_v46 }
 0x230   : > { %1165 = vst [vmem:[%s1832_s15 + $0x18] sm:$0xff] %v1141_v14   ;;  %v1161_v20 = vpack.c.bf16 %v792_v25, %v788_v18 }
 0x231   : > { %1304 = shalt.err (!%p1301_p3)
}
 0x232   : > { %s1305_s15 = scalar_lea.hbm %s1850_s28, 512  ;;  %s1309_s22 = scalar_lea.hbm %s1934_s6, 1024 }
 0x233   : > { %p1306_p4 = scmp.ne.s32.totalorder %s1850_s28, %s1305_s15  ;;  %p1310_p9 = scmp.lt.s32.totalorder %s1850_s28, %s1934_s6 }
 0x234   : > { %p1311_p10 = scmp.lt.s32.totalorder %s1309_s22, %s1305_s15 }
 0x235   : > { %p1307_p7 = pnand %p1306_p4, %p1465_p5 }
 0x236   : > { %p1312_p11 = por %p1311_p10, %p1310_p9 }
 0x237   : > { %p1308_p8 = pneg %p1307_p7 }
 0x239   : > { %p1313_p12 = pnand %p1312_p11, %p1308_p8 }
 0x23b   : > { %1316 = shalt.err (!%p1313_p12)
}
 0x23c   : > { %s1384_s0 = smov 64   ;;  %s1385_s14 = smov 4   ;;  %1168 = vst [vmem:[%s1835_s16 + $0x18] sm:$0xff] %v1161_v20  }
 0x23d   : > { %1193 = dma.vmem_to_hbm [thread:$0]  (%p1465_p5), %s1842_s17, 512, %s1850_s28, %s881_s13, %s1384_s0, %s1384_s0, %s1385_s14  }
 0x23e   : > { %s886_s20 = scalar_lea.sflag [#allocation5], %s1827_s8  ;;  %s1317_s15 = scalar_lea.vmem %s1852_s19, 512 }
 0x23f   : > { %p1318_p13 = scmp.ne.s32.totalorder %s1852_s19, %s1317_s15  ;;  %s1386_s18 = smov [#allocation4]  }
 0x240   : > { %s1321_s21 = sshll.u32 %s1386_s18, 4  ;;  %s1322_s21 = int_to_ptr.vmem [resolvable:$false] %s1321_s21 }
 0x241   : > { %p1319_p0 = pnand %p1318_p13, %p1465_p5  ;;  %s1323_s22 = scalar_lea.vmem %s1322_s21, 1024 }
 0x242   : > { %p1324_p2 = scmp.lt.s32.totalorder %s1852_s19, %s1322_s21  ;;  %p1325_p3 = scmp.lt.s32.totalorder %s1323_s22, %s1317_s15 }
 0x243   : > { %p1320_p1 = pneg %p1319_p0 }
 0x244   : > { %p1326_p4 = por %p1325_p3, %p1324_p2 }
 0x246   : > { %p1327_p7 = pnand %p1326_p4, %p1320_p1 }
 0x248   : > { %1330 = shalt.err (!%p1327_p7)
}
 0x249   : > { %s1331_s16 = scalar_lea.hbm %s1858_s29, 512  ;;  %s1335_s28 = scalar_lea.hbm %s1935_s7, 1024 }
 0x24a   : > { %p1332_p8 = scmp.ne.s32.totalorder %s1858_s29, %s1331_s16  ;;  %p1336_p11 = scmp.lt.s32.totalorder %s1858_s29, %s1935_s7 }
 0x24b   : > { %p1337_p12 = scmp.lt.s32.totalorder %s1335_s28, %s1331_s16 }
 0x24c   : > { %p1333_p9 = pnand %p1332_p8, %p1465_p5 }
 0x24d   : > { %p1338_p13 = por %p1337_p12, %p1336_p11 }
 0x24e   : > { %p1334_p10 = pneg %p1333_p9 }
 0x250   : > { %p1339_p0 = pnand %p1338_p13, %p1334_p10 }
 0x252   : > { %1342 = shalt.err (!%p1339_p0)
}
 0x253   : > { %1194 = dma.vmem_to_hbm [thread:$0]  (%p1465_p5), %s1852_s19, 512, %s1858_s29, %s886_s20, %s1384_s0, %s1384_s0, %s1385_s14  }
 0x254 PF: > { %p1204_p1 = scmp.ge.s32.totalorder %s1381_s27, 2  ;;  %s943_s9 = sand.u32 1, %s1369_s24  }
 0x255   : > { %s944_s15 = scalar_lea.sflag [#allocation3], %s943_s9 }
 0x256   : > { %p1198_p2 = pnand %p1204_p1, %p1469_p6 }
 0x258   : > { %p1199_p3 = pneg %p1198_p2 }
 0x25a   : > { %1360 = dma.done.wait (%p1199_p3), %s944_s15, 512  }
 0x25b   : > { %1362 = vsyncadd (%p1199_p3), %s944_s15, 4294966784  ;;  %s953_s18 = scalar_lea.sflag [#allocation5], %s943_s9 }
 0x25c   : > { %1364 = dma.done.wait (%p1199_p3), %s953_s18, 512  }
 0x25d   : > { %1366 = vsyncadd (%p1199_p3), %s953_s18, 4294966784  ;;  %p21_p5 = scmp.ge.s32.totalorder %s1452_s30, 4   ;;  %s1940_s24 = smov %s1373_s25 }
 0x25e   : > { %s1941_s25 = smov %s1377_s26  ;;  %s1942_s26 = smov %s1463_s10 }
 0x25f   : > { %s1943_s27 = smov %s1452_s30  ;;  %23 = sbr.rel (!%p21_p5) target bundleno = 7 (0x7), region = 104 }
 0x264   :  { %958 = vsyncpa [#allocation3], 1 }
 0x265   :  { %960 = vsyncpa [#allocation3 + $0x1], 1 }
 0x266   :  { %961 = vsyncpa [#allocation5], 1 }
 0x267   :  { %963 = vsyncpa [#allocation5 + $0x1], 1 }

</bundles_post_ra>
